<compile_context>
chip_gen: v7x
topology: tpu7x:2x2x1
jax: 0.10.0
libtpu: 0.0.40
codegen_flags: <defaults>
</compile_context>

<pallas_src>
import jax
import jax.numpy as jnp
from jax.experimental import pallas as pl
from jax.experimental.pallas import tpu as pltpu

LANE = 128
SUBLANE = 8


def mlp_kernel(x_ref, w1_ref, b1_ref, w2_ref, b2_ref, o_ref):
    # x arrives f32; cast to bf16 on the VPU right before the MXU.
    x = x_ref[...].astype(jnp.bfloat16)
    # hidden = sigmoid(x @ W1 + b1): bf16 MXU operands, f32 accumulation.
    h = jnp.dot(x, w1_ref[...], preferred_element_type=jnp.float32)
    h = h + b1_ref[...]            # f32 bias add (VPU)
    h = jax.nn.sigmoid(h)          # f32 sigmoid (EUP) -- keep f32 (v5e has no bf16 EUP)
    # out = hidden @ W2 + b2 (no activation); lane-dense padded output block.
    o = jnp.dot(h.astype(jnp.bfloat16), w2_ref[...],
                preferred_element_type=jnp.float32)
    o_ref[...] = (o + b2_ref[...]).astype(o_ref.dtype)


def _num_tensorcores():
    """2 on v7x (2 TensorCores/chip), otherwise 1 (v5e/v6e)."""
    try:
        kind = jax.devices()[0].device_kind.lower()
    except Exception:
        kind = ""
    return 2 if "v7" in kind else 1


def prepare_params(w1_t, b1, w2_t, b2):
    """One-time weight prep (cast / lane-pad), hoisted out of the forward path."""
    H = w1_t.shape[1]
    D_out = w2_t.shape[1]
    d_out_pad = pl.cdiv(D_out, LANE) * LANE
    w1b = w1_t.astype(jnp.bfloat16)
    b1f = b1.reshape(1, H).astype(jnp.float32)
    w2b = jnp.pad(w2_t, ((0, 0), (0, d_out_pad - D_out))).astype(jnp.bfloat16)
    b2f = jnp.pad(b2.reshape(1, D_out),
                  ((0, 0), (0, d_out_pad - D_out))).astype(jnp.float32)
    return (w1b, b1f, w2b, b2f), D_out


def mlp_forward(x, params, d_out, *, max_tile_b=512):
    """x: [B, D_in] f32; params: output of prepare_params()."""
    w1b, b1f, w2b, b2f = params
    B, D_in = x.shape
    H = w1b.shape[1]
    d_out_pad = w2b.shape[1]

    # Grid sizing: 1 step on single-TC chips, an even number of steps (>=2) on
    # v7x so both TensorCores get work; cap the per-step tile for big batches.
    tc = _num_tensorcores()
    n_steps = max(tc, pl.cdiv(B, max_tile_b))
    if tc == 2:
        n_steps = pl.cdiv(n_steps, 2) * 2
    row_quantum = SUBLANE * n_steps
    b_pad = pl.cdiv(B, row_quantum) * row_quantum
    tile_b = b_pad // n_steps

    xs = x if x.dtype == jnp.float32 else x.astype(jnp.float32)
    if b_pad != B:
        xs = jnp.pad(xs, ((0, b_pad - B), (0, 0)))

    # Constant-index (resident) operands: DMA once, single VMEM buffer.
    resident = pl.Buffered(1)

    out = pl.pallas_call(
        mlp_kernel,
        out_shape=jax.ShapeDtypeStruct((b_pad, d_out_pad), jnp.float32),
        grid=(n_steps,),
        in_specs=[
            pl.BlockSpec((tile_b, D_in), lambda i: (i, 0)),               # x: batch-tiled
            pl.BlockSpec((D_in, H), lambda i: (0, 0), pipeline_mode=resident),      # W1
            pl.BlockSpec((1, H), lambda i: (0, 0), pipeline_mode=resident),          # b1
            pl.BlockSpec((H, d_out_pad), lambda i: (0, 0), pipeline_mode=resident),  # W2 (padded)
            pl.BlockSpec((1, d_out_pad), lambda i: (0, 0), pipeline_mode=resident),  # b2 (padded)
        ],
        out_specs=pl.BlockSpec((tile_b, d_out_pad), lambda i: (i, 0)),
        compiler_params=pltpu.CompilerParams(
            dimension_semantics=("parallel",),
        ),
    )(xs, w1b, b1f, w2b, b2f)

    # Strip batch + lane padding outside the kernel.
    return out[:B, :d_out]


def reference_forward(x, w1_t, b1, w2_t, b2):
    # Matches the kernel numerics: bf16 matmul operands, f32 accumulation,
    # f32 bias add + sigmoid.
    h = jnp.dot(x.astype(jnp.bfloat16), w1_t.astype(jnp.bfloat16),
                preferred_element_type=jnp.float32) + b1.reshape(1, -1)
    h = jax.nn.sigmoid(h)
    return jnp.dot(h.astype(jnp.bfloat16), w2_t.astype(jnp.bfloat16),
                   preferred_element_type=jnp.float32) + b2.reshape(1, -1)


if __name__ == "__main__":
    # Small shapes consistent with Net(D_in, H, D_out).
    B, D_in, H, D_out = 64, 64, 32, 10

    key = jax.random.PRNGKey(0)
    kx, k1, kb1, k2, kb2 = jax.random.split(key, 5)

    x = jax.random.normal(kx, (B, D_in), dtype=jnp.float32)

    # PyTorch-like uniform init with scale 1/sqrt(fan_in).
    s1 = 1.0 / jnp.sqrt(D_in)
    s2 = 1.0 / jnp.sqrt(H)
    w1_t = jax.random.uniform(k1, (D_in, H), minval=-s1, maxval=s1, dtype=jnp.float32)
    b1 = jax.random.uniform(kb1, (1, H), minval=-s1, maxval=s1, dtype=jnp.float32)
    w2_t = jax.random.uniform(k2, (H, D_out), minval=-s2, maxval=s2, dtype=jnp.float32)
    b2 = jax.random.uniform(kb2, (1, D_out), minval=-s2, maxval=s2, dtype=jnp.float32)

    # One-time weight prep; steady-state forward is a single jitted graph
    # (pallas_call + output slice).
    params, d_out = prepare_params(w1_t, b1, w2_t, b2)
    fwd = jax.jit(lambda xx: mlp_forward(xx, params, d_out))

    out = jax.block_until_ready(fwd(x))

    ref = reference_forward(x, w1_t, b1, w2_t, b2)
    assert out.shape == (B, D_out), out.shape
    assert jnp.allclose(out, ref, atol=2e-2, rtol=2e-2), float(jnp.max(jnp.abs(out - ref)))

    print("KERNEL_OK")
</pallas_src>

<mosaic_0001>
module attributes {stable_mosaic.version = 11 : i64} {
  func.func @mlp_kernel(%arg0: i32, %arg1: memref<64x64xf32, #tpu.memory_space<vmem>>, %arg2: memref<64x32xbf16, #tpu.memory_space<vmem>>, %arg3: memref<1x32xf32, #tpu.memory_space<vmem>>, %arg4: memref<32x128xbf16, #tpu.memory_space<vmem>>, %arg5: memref<1x128xf32, #tpu.memory_space<vmem>>, %arg6: memref<64x128xf32, #tpu.memory_space<vmem>>) attributes {dimension_semantics = [#tpu.dimension_semantics<parallel>], iteration_bounds = array<i64: 1>, scalar_prefetch = 0 : i64, scratch_operands = 0 : i64, tpu.core_type = #tpu.core_type<tc>, window_params = [{transform_indices = @transform_0, window_bounds = array<i64: 64, 64>}, {pipeline_mode = #tpu.pipeline_mode<synchronous>, transform_indices = @transform_1, window_bounds = array<i64: 64, 32>}, {pipeline_mode = #tpu.pipeline_mode<synchronous>, transform_indices = @transform_2, window_bounds = array<i64: 1, 32>}, {pipeline_mode = #tpu.pipeline_mode<synchronous>, transform_indices = @transform_3, window_bounds = array<i64: 32, 128>}, {pipeline_mode = #tpu.pipeline_mode<synchronous>, transform_indices = @transform_4, window_bounds = array<i64: 1, 128>}, {transform_indices = @transform_5, window_bounds = array<i64: 64, 128>}]} {
    %c0 = arith.constant 0 : index
    %c0_0 = arith.constant 0 : index
    %0 = vector.load %arg1[%c0, %c0_0] : memref<64x64xf32, #tpu.memory_space<vmem>>, vector<64x64xf32>
    %1 = arith.truncf %0 : vector<64x64xf32> to vector<64x64xbf16>
    %c0_1 = arith.constant 0 : index
    %c0_2 = arith.constant 0 : index
    %2 = vector.load %arg2[%c0_1, %c0_2] : memref<64x32xbf16, #tpu.memory_space<vmem>>, vector<64x32xbf16>
    %cst = arith.constant dense<0.000000e+00> : vector<64x32xf32>
    %3 = tpu.matmul %1, %2, %cst {dimension_numbers = #tpu.dot_dimension_numbers<[1], [0], [0], [1], [0, 0, 1, 1], [], []>} : vector<64x64xbf16>, vector<64x32xbf16>, vector<64x32xf32> -> vector<64x32xf32>
    %c0_3 = arith.constant 0 : index
    %c0_4 = arith.constant 0 : index
    %4 = vector.load %arg3[%c0_3, %c0_4] : memref<1x32xf32, #tpu.memory_space<vmem>>, vector<1x32xf32>
    %5 = vector.broadcast %4 : vector<1x32xf32> to vector<64x32xf32>
    %6 = arith.addf %3, %5 : vector<64x32xf32>
    %7 = arith.negf %6 : vector<64x32xf32>
    %8 = math.exp %7 : vector<64x32xf32>
    %cst_5 = arith.constant 1.000000e+00 : f32
    %9 = vector.broadcast %cst_5 : f32 to vector<64x32xf32>
    %10 = arith.addf %9, %8 : vector<64x32xf32>
    %11 = arith.divf %9, %10 : vector<64x32xf32>
    %12 = arith.truncf %11 : vector<64x32xf32> to vector<64x32xbf16>
    %c0_6 = arith.constant 0 : index
    %c0_7 = arith.constant 0 : index
    %13 = vector.load %arg4[%c0_6, %c0_7] : memref<32x128xbf16, #tpu.memory_space<vmem>>, vector<32x128xbf16>
    %cst_8 = arith.constant dense<0.000000e+00> : vector<64x128xf32>
    %14 = tpu.matmul %12, %13, %cst_8 {dimension_numbers = #tpu.dot_dimension_numbers<[1], [0], [0], [1], [0, 0, 1, 1], [], []>} : vector<64x32xbf16>, vector<32x128xbf16>, vector<64x128xf32> -> vector<64x128xf32>
    %c0_9 = arith.constant 0 : index
    %c0_10 = arith.constant 0 : index
    %15 = vector.load %arg5[%c0_9, %c0_10] : memref<1x128xf32, #tpu.memory_space<vmem>>, vector<1x128xf32>
    %16 = vector.broadcast %15 : vector<1x128xf32> to vector<64x128xf32>
    %17 = arith.addf %14, %16 : vector<64x128xf32>
    %c0_11 = arith.constant 0 : index
    %c0_12 = arith.constant 0 : index
    %18 = vector.load %arg6[%c0_11, %c0_12] : memref<64x128xf32, #tpu.memory_space<vmem>>, vector<64x128xf32>
    tpu.vector_store %arg6[%c0_11, %c0_12], %17 {strides = array<i32>} : memref<64x128xf32, #tpu.memory_space<vmem>>, vector<64x128xf32>,
    return
  }
  func.func @transform_0(%arg0: i32) -> (i32, i32) {
    %c0_i32 = arith.constant 0 : i32
    %c0_i32_0 = arith.constant 0 : i32
    return %arg0, %c0_i32 : i32, i32
  }
  func.func @transform_1(%arg0: i32) -> (i32, i32) {
    %c0_i32 = arith.constant 0 : i32
    %c0_i32_0 = arith.constant 0 : i32
    %c0_i32_1 = arith.constant 0 : i32
    return %c0_i32, %c0_i32_0 : i32, i32
  }
  func.func @transform_2(%arg0: i32) -> (i32, i32) {
    %c0_i32 = arith.constant 0 : i32
    %c0_i32_0 = arith.constant 0 : i32
    %c0_i32_1 = arith.constant 0 : i32
    return %c0_i32, %c0_i32_0 : i32, i32
  }
  func.func @transform_3(%arg0: i32) -> (i32, i32) {
    %c0_i32 = arith.constant 0 : i32
    %c0_i32_0 = arith.constant 0 : i32
    %c0_i32_1 = arith.constant 0 : i32
    return %c0_i32, %c0_i32_0 : i32, i32
  }
  func.func @transform_4(%arg0: i32) -> (i32, i32) {
    %c0_i32 = arith.constant 0 : i32
    %c0_i32_0 = arith.constant 0 : i32
    %c0_i32_1 = arith.constant 0 : i32
    return %c0_i32, %c0_i32_0 : i32, i32
  }
  func.func @transform_5(%arg0: i32) -> (i32, i32) {
    %c0_i32 = arith.constant 0 : i32
    %c0_i32_0 = arith.constant 0 : i32
    return %arg0, %c0_i32 : i32, i32
  }
}

</mosaic_0001>

<bundles_post_ra>
// kernel: _lambda_.1
= control target key start
LH: loop header
LB: loop body
LE: loop exit
PB: predicated region body
PF: predicated region fallthrough
CT: control target
= control target key end

     0   :  { %10 = vsyncpa [#allocation3], 0  ;;  %s603_s0 = inlined_call_operand.hbm [shape: f32[64,64], index: 0, kind: input, shape index: {}]   ;;  %s604_s1 = inlined_call_operand.hbm [shape: bf16[64,32], index: 1, kind: input, shape index: {}]   ;;  %s605_s2 = inlined_call_operand.vmem [shape: f32[1,32], index: 2, kind: input, shape index: {}]   ;;  %s606_s3 = inlined_call_operand.vmem [shape: bf16[32,128], index: 3, kind: input, shape index: {}]   ;;  %s607_s4 = inlined_call_operand.vmem [shape: f32[1,128], index: 4, kind: input, shape index: {}]   ;;  %s608_s5 = inlined_call_operand.vmem [shape: f32[64,128], index: 5, kind: output, shape index: {}]  }
   0x1   :  { %11 = vsyncpa [#allocation5], 0  ;;  %s503_s18 = smov [#allocation2]   ;;  %s455_s22 = scalar_lea.hbm %s603_s0, 1024 }
   0x2   :  { %s17_s19 = sshll.u32 %s503_s18, 4  ;;  %p456_p0 = scmp.ne.s32.totalorder %s603_s0, %s455_s22  ;;  %s18_s19 = int_to_ptr.vmem [resolvable:$true] %s17_s19 }
   0x3   :  { %p459_p1 = scmp.lt.u32.totalorder %s455_s22, %s603_s0 }
   0x5   :  { %p461_p2 = pnand %p459_p1, %p456_p0 }
   0x7   :  { %464 = shalt.err (!%p461_p2)
}
   0x8   :  { %s465_s27 = scalar_lea.vmem %s18_s19, 1024  ;;  %p470_p4 = scmp.lt.s32.totalorder %s18_s19, %s18_s19 }
   0x9   :  { %p466_p3 = scmp.ne.s32.totalorder %s18_s19, %s465_s27  ;;  %p471_p5 = scmp.lt.s32.totalorder %s465_s27, %s465_s27 }
   0xb   :  { %p472_p6 = por %p471_p5, %p470_p4 }
   0xd   :  { %p473_p7 = pnand %p472_p6, %p466_p3 }
   0xf   :  { %476 = shalt.err (!%p473_p7)
}
  0x10   :  { %s504_s28 = smov 128   ;;  %s505_s29 = smov 8  }
  0x11   :  { %23 = dma.hbm_to_vmem [thread:$0]  %s603_s0, 1024, %s18_s19, [#allocation3], %s504_s28, %s504_s28, %s505_s29  }
  0x12   :  { %s506_s7 = smov [#allocation4]   ;;  %s477_s11 = scalar_lea.hbm %s604_s1, 512 }
  0x13   :  { %s29_s8 = sshll.u32 %s506_s7, 4  ;;  %p478_p8 = scmp.ne.s32.totalorder %s604_s1, %s477_s11  ;;  %s30_s8 = int_to_ptr.vmem [resolvable:$true] %s29_s8 }
  0x14   :  { %p481_p9 = scmp.lt.u32.totalorder %s477_s11, %s604_s1 }
  0x16   :  { %p483_p10 = pnand %p481_p9, %p478_p8 }
  0x18   :  { %486 = shalt.err (!%p483_p10)
}
  0x19   :  { %s487_s16 = scalar_lea.vmem %s30_s8, 512  ;;  %p492_p12 = scmp.lt.s32.totalorder %s30_s8, %s30_s8 }
  0x1a   :  { %p488_p11 = scmp.ne.s32.totalorder %s30_s8, %s487_s16  ;;  %p493_p13 = scmp.lt.s32.totalorder %s487_s16, %s487_s16 }
  0x1c   :  { %p494_p0 = por %p493_p13, %p492_p12 }
  0x1e   :  { %p495_p1 = pnand %p494_p0, %p488_p11 }
  0x20   :  { %498 = shalt.err (!%p495_p1)
}
  0x21   :  { %s507_s0 = smov 64   ;;  %s508_s17 = smov 4  }
  0x22   :  { %35 = dma.hbm_to_vmem [thread:$0]  %s604_s1, 512, %s30_s8, [#allocation5], %s507_s0, %s507_s0, %s508_s17  }
  0x23   :  { %499 = dma.done.wait [#allocation3], 1024  }
  0x24   :  { %500 = vsyncadd [#allocation3], 4294966272 }
  0x25   :  { %501 = dma.done.wait [#allocation5], 512  }
  0x26   :  { %502 = vsyncadd [#allocation5], 4294966784  ;;  %v417_v0 = vld [vmem:[#allocation4] sm:$0xff]   ;;  %v418_v1 = vld [vmem:[#allocation4 + $0x8] sm:$0xff]   ;;  %vm100_vm0 = vcmask 523264   ;;  %vm253_vm1 = vcmask 261120  }
  0x27   :  { %383 = vmatprep.subr.bf16.mxu0 %v417_v0  ;;  %v419_v2 = vld [vmem:[#allocation4 + $0x10] sm:$0xff]   ;;  %v49_v3 = vld [vmem:[#allocation2] sm:$0xff]  ;;  %v50_v4 = vld [vmem:[#allocation2 + $0x8] sm:$0xff] }
  0x28   :  { %384 = vmatpush3.bf16.msra.mxu0 %v417_v0  ;;  %v57_v5 = vpack.c.bf16 %v50_v4, %v49_v3  ;;  %v420_v6 = vld [vmem:[#allocation4 + $0x18] sm:$0xff]   ;;  %v51_v7 = vld [vmem:[#allocation2 + $0x10] sm:$0xff]  ;;  %v53_v9 = vld [vmem:[#allocation2 + $0x20] sm:$0xff] }
  0x29   :  { %385 = vmatprep.subr.bf16.mxu0 %v418_v1  ;;  %v52_v8 = vld [vmem:[#allocation2 + $0x18] sm:$0xff]  ;;  %v54_v10 = vld [vmem:[#allocation2 + $0x28] sm:$0xff]  ;;  %v55_v13 = vld [vmem:[#allocation2 + $0x30] sm:$0xff] }
  0x2a   :  { %391 = vmatprep.mubr.msk.bf16.mxu0 %vm100_vm0, %v57_v5  ;;  %v58_v11 = vpack.c.bf16 %v52_v8, %v51_v7  ;;  %v59_v12 = vpack.c.bf16 %v54_v10, %v53_v9  ;;  %v56_v14 = vld [vmem:[#allocation2 + $0x38] sm:$0xff]  ;;  %v421_v16 = vld [vmem:[%s606_s3] sm:$0xff]   ;;  %v422_v17 = vld [vmem:[%s606_s3 + $0x8] sm:$0xff]  }
  0x2b   :  { %v60_v15 = vpack.c.bf16 %v56_v14, %v55_v13  ;;  %399 = vmatprep.subr.bf16.mxu1 %v421_v16  ;;  %v345_v18 = vld [vmem:[%s605_s2] ss:$0 sm:$0xff] }
  0x2c   :  { %386 = vmatpush3.bf16.msra.mxu0 %v418_v1  ;;  %400 = vmatpush3.bf16.msra.mxu1 %v421_v16  ;;  %v362_v7 = vld [vmem:[%s607_s4] ss:$0 sm:$0xff] }
  0x2d   :  { %387 = vmatprep.subr.bf16.mxu0 %v419_v2  ;;  %401 = vmatprep.subr.bf16.mxu1 %v422_v17 }
  0x30   :  { %388 = vmatpush3.bf16.msra.mxu0 %v419_v2  ;;  %402 = vmatpush3.bf16.msra.mxu1 %v422_v17 }
  0x31   :  { %389 = vmatprep.subr.bf16.mxu0 %v420_v6 }
  0x34   :  { %390 = vmatpush3.bf16.msra.mxu0 %v420_v6 }
  0x37   :  { %392 = vmatmul.mubr.msk.bf16.vlgmr.msra.gmra.mrb[0].mxu0 %vm100_vm0, %v58_v11 }
  0x38   :  { %395 = vmatprep.mubr.msk.bf16.mxu0 %vm100_vm0, %v59_v12 }
  0x3f   :  { %396 = vmatmul.mubr.msk.bf16.gmra.mrb[4].mxu0 %vm100_vm0, %v60_v15 }
 0x10a   :  { %v393_v19 = vpop.f32.mrb[0].mxu0 }
 0x10b   :  { %v156_v20 = vadd.f32 %v393_v19, %v345_v18  ;;  %v147_v21 = vpop.f32.mrb[1].mxu0 }
 0x10c   :  { %v148_v22 = vadd.f32 %v345_v18, %v147_v21  ;;  %v394_v23 = vpop.f32.mrb[2].mxu0 }
 0x10d   :  { %v356_v24 = vmul.f32 -1.442695, %v156_v20  ;;  %v159_v25 = vadd.f32 %v394_v23, %v345_v18  ;;  %v150_v26 = vpop.f32.mrb[3].mxu0 }
 0x10e   :  { %v354_v27 = vmul.f32 -1.442695, %v148_v22  ;;  %v151_v28 = vadd.f32 %v345_v18, %v150_v26 }
 0x10f   :  { %423 = vpow2.f32 %v356_v24  ;;  %v357_v29 = vmul.f32 -1.442695, %v159_v25 }
 0x110   :  { %425 = vpow2.f32 %v354_v27  ;;  %v355_v30 = vmul.f32 -1.442695, %v151_v28 }
 0x111   :  { %427 = vpow2.f32 %v357_v29 }
 0x112   :  { %429 = vpow2.f32 %v355_v30  ;;  %v397_v31 = vpop.f32.mrb[4].mxu0 }
 0x113   :  { %v172_v32 = vadd.f32 %v397_v31, %v345_v18  ;;  %v163_v33 = vpop.f32.mrb[5].mxu0 }
 0x114   :  { %v164_v34 = vadd.f32 %v345_v18, %v163_v33  ;;  %v398_v35 = vpop.f32.mrb[6].mxu0 }
 0x115   :  { %v360_v36 = vmul.f32 -1.442695, %v172_v32  ;;  %v175_v37 = vadd.f32 %v398_v35, %v345_v18  ;;  %v166_v38 = vpop.f32.mrb[7].mxu0 }
 0x116   :  { %v358_v39 = vmul.f32 -1.442695, %v164_v34  ;;  %v167_v40 = vadd.f32 %v345_v18, %v166_v38 }
 0x117   :  { %431 = vpow2.f32 %v360_v36  ;;  %v361_v41 = vmul.f32 -1.442695, %v175_v37 }
 0x118   :  { %433 = vpow2.f32 %v358_v39  ;;  %v359_v42 = vmul.f32 -1.442695, %v167_v40 }
 0x119   :  { %v424_v43 = vpop.eup %423  ;;  %435 = vpow2.f32 %v361_v41 }
 0x11a   :  { %v426_v44 = vpop.eup %425  ;;  %v204_v45 = vadd.f32 1.0, %v424_v43  ;;  %437 = vpow2.f32 %v359_v42 }
 0x11b   :  { %v428_v46 = vpop.eup %427  ;;  %v202_v47 = vadd.f32 1.0, %v426_v44 }
 0x11c   :  { %v430_v48 = vpop.eup %429  ;;  %439 = vrcp.f32 %v204_v45  ;;  %v205_v49 = vadd.f32 1.0, %v428_v46 }
 0x11d   :  { %441 = vrcp.f32 %v202_v47  ;;  %v203_v50 = vadd.f32 1.0, %v430_v48 }
 0x11e   :  { %443 = vrcp.f32 %v205_v49 }
 0x11f   :  { %445 = vrcp.f32 %v203_v50 }
 0x121   :  { %v432_v51 = vpop.eup %431 }
 0x122   :  { %v434_v52 = vpop.eup %433  ;;  %v208_v53 = vadd.f32 1.0, %v432_v51 }
 0x123   :  { %v436_v54 = vpop.eup %435  ;;  %v206_v55 = vadd.f32 1.0, %v434_v52 }
 0x124   :  { %v438_v56 = vpop.eup %437  ;;  %447 = vrcp.f32 %v208_v53  ;;  %v209_v57 = vadd.f32 1.0, %v436_v54 }
 0x125   :  { %449 = vrcp.f32 %v206_v55  ;;  %v207_v58 = vadd.f32 1.0, %v438_v56 }
 0x126   :  { %v440_v59 = vpop.eup %439  ;;  %451 = vrcp.f32 %v209_v57 }
 0x127   :  { %v442_v60 = vpop.eup %441  ;;  %453 = vrcp.f32 %v207_v58 }
 0x128   :  { %v444_v61 = vpop.eup %443 }
 0x129   :  { %v446_v62 = vpop.eup %445  ;;  %v227_v63 = vpack.c.bf16 %v444_v61, %v440_v59 }
 0x12a   :  { %v226_v0 = vpack.c.bf16 %v446_v62, %v442_v60 }
 0x12c   :  { %403 = vmatprep.mubr.msk.bf16.mxu1 %vm253_vm1, %v226_v0 }
 0x12d   :  { %404 = vmatmul.mubr.msk.bf16.vlgmr.msra.gmra.mrb[0].mxu1 %vm253_vm1, %v227_v63 }
 0x12e   :  { %v448_v1 = vpop.eup %447 }
 0x12f   :  { %v450_v2 = vpop.eup %449 }
 0x130   :  { %v452_v3 = vpop.eup %451 }
 0x131   :  { %v454_v4 = vpop.eup %453  ;;  %v229_v5 = vpack.c.bf16 %v452_v3, %v448_v1 }
 0x132   :  { %v228_v6 = vpack.c.bf16 %v454_v4, %v450_v2 }
 0x134   :  { %407 = vmatprep.mubr.msk.bf16.mxu1 %vm253_vm1, %v228_v6 }
 0x135   :  { %408 = vmatmul.mubr.msk.bf16.gmra.mrb[4].mxu1 %vm253_vm1, %v229_v5 }
 0x200   :  { %v405_v8 = vpop.f32.mrb[0].mxu1 }
 0x201   :  { %v309_v9 = vadd.f32 %v405_v8, %v362_v7  ;;  %v300_v10 = vpop.f32.mrb[1].mxu1 }
 0x202   :  { %v301_v11 = vadd.f32 %v362_v7, %v300_v10  ;;  %v406_v12 = vpop.f32.mrb[2].mxu1 }
 0x203   :  { %333 = vst [vmem:[%s608_s5 + $0x10] sm:$0xff] %v309_v9  ;;  %v312_v13 = vadd.f32 %v406_v12, %v362_v7  ;;  %v303_v14 = vpop.f32.mrb[3].mxu1 }
 0x204   :  { %331 = vst [vmem:[%s608_s5] sm:$0xff] %v301_v11  ;;  %v304_v15 = vadd.f32 %v362_v7, %v303_v14 }
 0x205   :  { %334 = vst [vmem:[%s608_s5 + $0x18] sm:$0xff] %v312_v13 }
 0x206   :  { %332 = vst [vmem:[%s608_s5 + $0x8] sm:$0xff] %v304_v15 }
 0x208   :  { %v409_v16 = vpop.f32.mrb[4].mxu1 }
 0x209   :  { %v325_v17 = vadd.f32 %v409_v16, %v362_v7  ;;  %v316_v18 = vpop.f32.mrb[5].mxu1 }
 0x20a   :  { %v317_v19 = vadd.f32 %v362_v7, %v316_v18  ;;  %v410_v20 = vpop.f32.mrb[6].mxu1 }
 0x20b   :  { %337 = vst [vmem:[%s608_s5 + $0x30] sm:$0xff] %v325_v17  ;;  %v328_v21 = vadd.f32 %v410_v20, %v362_v7  ;;  %v319_v22 = vpop.f32.mrb[7].mxu1 }
 0x20c   :  { %335 = vst [vmem:[%s608_s5 + $0x20] sm:$0xff] %v317_v19  ;;  %v320_v23 = vadd.f32 %v362_v7, %v319_v22 }
 0x20d   :  { %338 = vst [vmem:[%s608_s5 + $0x38] sm:$0xff] %v328_v21 }
 0x20e   :  { %336 = vst [vmem:[%s608_s5 + $0x28] sm:$0xff] %v320_v23 }
 0x20f   :  { %343 = vsyncpa [#allocation3], 1 }
 0x210   :  { %344 = vsyncpa [#allocation5], 1 }

</bundles_post_ra>
